<compile_context>
chip_gen: v7x
topology: tpu7x:2x2x1
jax: 0.10.0
libtpu: 0.0.40
codegen_flags: <defaults>
</compile_context>

<pallas_src>
import functools

import jax
import jax.numpy as jnp
from jax.experimental import pallas as pl
from jax.experimental.pallas import tpu as pltpu

LANE = 128
SUBLANE = 8
MAX_TILE_B = 1024  # v5e/v6e sweet spot; v7x still gets >=2 grid steps at batch>=2048.


def _round_up(x: int, m: int) -> int:
    return ((x + m - 1) // m) * m


# ---------------------------------------------------------------------------
# Kernel: pure matmul + ReLU chain (dueling epilogue pre-folded into w_out).
# ---------------------------------------------------------------------------
def _make_kernel(num_hidden_layers: int):
    def kernel(*refs):
        # refs: x, w_first, b_hidden, [w_hidden (if L>1)], w_out, b_out, q
        x_ref = refs[0]
        w_first_ref = refs[1]
        b_hidden_ref = refs[2]
        idx = 3
        w_hidden_ref = None
        if num_hidden_layers > 1:
            w_hidden_ref = refs[idx]
            idx += 1
        w_out_ref = refs[idx]
        b_out_ref = refs[idx + 1]
        q_ref = refs[idx + 2]

        # First hidden layer: x (B, h) @ w_first (h, HC_PAD) -> both branches.
        h = jnp.dot(x_ref[...].astype(jnp.float32), w_first_ref[...],
                    preferred_element_type=jnp.float32)
        h = jnp.maximum(h + b_hidden_ref[0:1, :], 0.0)

        # Remaining hidden layers: block-diagonal packed (HC_PAD, HC_PAD).
        for l in range(1, num_hidden_layers):
            h = jnp.dot(h, w_hidden_ref[l - 1],
                        preferred_element_type=jnp.float32)
            h = jnp.maximum(h + b_hidden_ref[l:l + 1, :], 0.0)

        # Fused (dueling-folded) output head: (HC_PAD, n_actions).
        q = jnp.dot(h, w_out_ref[...],
                    preferred_element_type=jnp.float32) + b_out_ref[...]
        q_ref[...] = q.astype(q_ref.dtype)

    return kernel


# ---------------------------------------------------------------------------
# Parameter init (PyTorch-style) and static packing
# ---------------------------------------------------------------------------
def init_mlp_params(key, hidden_size: int, n_actions: int,
                    num_hidden_layers: int, dueling_dqn: bool):
    """Uniform +-1/sqrt(fan_in) init. Weights stored as [in, out]."""

    def linear(key, fan_in, fan_out):
        kw, kb = jax.random.split(key)
        bound = 1.0 / jnp.sqrt(fan_in)
        w = jax.random.uniform(kw, (fan_in, fan_out), jnp.float32, -bound, bound)
        b = jax.random.uniform(kb, (1, fan_out), jnp.float32, -bound, bound)
        return w, b

    params = []
    for _ in range(num_hidden_layers):
        key, sub = jax.random.split(key)
        params.extend(linear(sub, hidden_size, hidden_size))
    key, sub = jax.random.split(key)
    params.extend(linear(sub, hidden_size, n_actions))
    if dueling_dqn:
        for _ in range(num_hidden_layers):
            key, sub = jax.random.split(key)
            params.extend(linear(sub, hidden_size, hidden_size))
        key, sub = jax.random.split(key)
        params.extend(linear(sub, hidden_size, 1))
    return params


def pack_params(raw_params, hidden_size: int, n_actions: int,
                num_hidden_layers: int, dueling_dqn: bool):
    """Pack both branches into lane-padded fused arrays; fold dueling head.

    Zero-padding is exact: ReLU(0) = 0 and padded weight rows/cols are zero.
    NOTE: weights could be stored bf16 (halves weight DMA / VMEM) at the cost
    of ~1e-3 output error vs. the f32 reference; kept f32 here.
    """
    h = hidden_size
    L = num_hidden_layers
    hc = 2 * h if dueling_dqn else h
    hc_pad = max(LANE, _round_up(hc, LANE))

    n_branch = 2 * (L + 1)
    adv_p = raw_params[:n_branch]
    val_p = raw_params[n_branch:2 * n_branch] if dueling_dqn else None

    # First hidden layer: concat both branches along N.
    w_first = jnp.zeros((h, hc_pad), jnp.float32)
    w_first = w_first.at[:, :h].set(adv_p[0])
    if dueling_dqn:
        w_first = w_first.at[:, h:2 * h].set(val_p[0])

    # All hidden-layer biases stacked into one (L, HC_PAD) array.
    b_hidden = jnp.zeros((L, hc_pad), jnp.float32)
    for l in range(L):
        b_hidden = b_hidden.at[l, :h].set(adv_p[2 * l + 1][0])
        if dueling_dqn:
            b_hidden = b_hidden.at[l, h:2 * h].set(val_p[2 * l + 1][0])

    # Deeper hidden layers: block-diagonal.
    w_hidden = None
    if L > 1:
        w_hidden = jnp.zeros((L - 1, hc_pad, hc_pad), jnp.float32)
        for l in range(1, L):
            w_hidden = w_hidden.at[l - 1, :h, :h].set(adv_p[2 * l])
            if dueling_dqn:
                w_hidden = w_hidden.at[l - 1, h:2 * h, h:2 * h].set(val_p[2 * l])

    # Output head with the dueling epilogue folded in:
    #   Q_j = h_adv @ (w_adv[:, j] - mean_k w_adv[:, k])
    #       + h_val @ w_val[:, 0]
    #       + (b_adv[j] - mean_k b_adv[k] + b_val)
    w_adv, b_adv = adv_p[-2], adv_p[-1]
    w_out = jnp.zeros((hc_pad, n_actions), jnp.float32)
    b_out = jnp.zeros((1, n_actions), jnp.float32)
    if dueling_dqn:
        w_val, b_val = val_p[-2], val_p[-1]
        w_out = w_out.at[:h, :].set(
            w_adv - jnp.mean(w_adv, axis=1, keepdims=True))
        w_out = w_out.at[h:2 * h, :].set(
            jnp.broadcast_to(w_val, (h, n_actions)))
        b_out = b_out.at[0, :].set(
            b_adv[0] - jnp.mean(b_adv[0]) + b_val[0, 0])
    else:
        w_out = w_out.at[:h, :].set(w_adv)
        b_out = b_out.at[0, :].set(b_adv[0])

    if L > 1:
        return (w_first, b_hidden, w_hidden, w_out, b_out)
    return (w_first, b_hidden, w_out, b_out)


# ---------------------------------------------------------------------------
# Forward wrapper
# ---------------------------------------------------------------------------
@functools.partial(jax.jit, static_argnames=("num_hidden_layers", "max_tile_b"))
def mlp_forward(x, packed, *, num_hidden_layers: int, max_tile_b: int = MAX_TILE_B):
    batch, h = x.shape
    w_first = packed[0]
    b_hidden = packed[1]
    if num_hidden_layers > 1:
        w_hidden, w_out, b_out = packed[2], packed[3], packed[4]
    else:
        w_hidden, w_out, b_out = None, packed[2], packed[3]
    n_actions = w_out.shape[1]

    # Batch tiling without any wrapper-side pad/slice copies:
    #  * batch <= cap  -> single block equal to the full array (no masking).
    #  * batch  > cap  -> cdiv grid; ragged last block handled by Pallas'
    #                     masked read/writeback (rows are independent).
    if batch <= max_tile_b:
        tile_b = batch
    else:
        tile_b = max_tile_b
    grid = (pl.cdiv(batch, tile_b),)

    kernel = _make_kernel(num_hidden_layers)

    in_specs = [
        pl.BlockSpec((tile_b, h), lambda i: (i, 0)),            # x tile
        pl.BlockSpec(w_first.shape, lambda i: (0, 0)),          # resident
        pl.BlockSpec(b_hidden.shape, lambda i: (0, 0)),         # resident
    ]
    args = [x, w_first, b_hidden]
    if num_hidden_layers > 1:
        in_specs.append(pl.BlockSpec(w_hidden.shape, lambda i: (0, 0, 0)))
        args.append(w_hidden)
    in_specs += [
        pl.BlockSpec(w_out.shape, lambda i: (0, 0)),            # resident
        pl.BlockSpec(b_out.shape, lambda i: (0, 0)),            # resident
    ]
    args += [w_out, b_out]

    return pl.pallas_call(
        kernel,
        out_shape=jax.ShapeDtypeStruct((batch, n_actions), x.dtype),
        grid=grid,
        in_specs=in_specs,
        out_specs=pl.BlockSpec((tile_b, n_actions), lambda i: (i, 0)),
        compiler_params=pltpu.CompilerParams(
            dimension_semantics=("parallel",),
        ),
    )(*args)


# ---------------------------------------------------------------------------
# Pure-JAX reference (operates on the raw, unpacked parameters)
# ---------------------------------------------------------------------------
def mlp_forward_ref(x, params, *, num_hidden_layers: int, dueling_dqn: bool):
    n_branch = 2 * (num_hidden_layers + 1)
    adv_p = params[:n_branch]
    val_p = params[n_branch:2 * n_branch] if dueling_dqn else None

    def branch(hh, p):
        for l in range(num_hidden_layers):
            hh = jnp.maximum(hh @ p[2 * l] + p[2 * l + 1], 0.0)
        return hh @ p[-2] + p[-1]

    adv = branch(x, adv_p)
    if dueling_dqn:
        val = branch(x, val_p)
        return val + adv - jnp.mean(adv, axis=-1, keepdims=True)
    return adv


# ---------------------------------------------------------------------------
# Main
# ---------------------------------------------------------------------------
if __name__ == "__main__":
    hidden_size = 32
    n_actions = 4

    configs = [
        dict(batch=8, num_hidden_layers=1, dueling_dqn=True,
             max_tile_b=MAX_TILE_B),
        dict(batch=20, num_hidden_layers=2, dueling_dqn=True,
             max_tile_b=MAX_TILE_B),
        dict(batch=16, num_hidden_layers=1, dueling_dqn=False,
             max_tile_b=MAX_TILE_B),
        # Exercises the multi-step grid with a ragged last block (20 = 8+8+4),
        # i.e. the masked-writeback path used for large batches.
        dict(batch=20, num_hidden_layers=2, dueling_dqn=True, max_tile_b=8),
    ]

    key = jax.random.PRNGKey(0)
    for cfg in configs:
        key, k_x, k_p = jax.random.split(key, 3)
        batch = cfg["batch"]
        L = cfg["num_hidden_layers"]
        dueling = cfg["dueling_dqn"]

        x = jax.random.normal(k_x, (batch, hidden_size), dtype=jnp.float32)
        raw = init_mlp_params(k_p, hidden_size, n_actions, L, dueling)
        packed = pack_params(raw, hidden_size, n_actions, L, dueling)

        q = mlp_forward(x, packed, num_hidden_layers=L,
                        max_tile_b=cfg["max_tile_b"])
        q = jax.block_until_ready(q)

        q_ref = mlp_forward_ref(x, raw, num_hidden_layers=L,
                                dueling_dqn=dueling)
        assert q.shape == (batch, n_actions), (q.shape, batch, n_actions)
        assert jnp.allclose(q, q_ref, atol=1e-5, rtol=1e-5), \
            f"mismatch vs reference for config {cfg}"

    print("KERNEL_OK")
</pallas_src>

<mosaic_0001>
module attributes {stable_mosaic.version = 11 : i64} {
  func.func @kernel(%arg0: i32, %arg1: memref<8x32xf32, #tpu.memory_space<vmem>>, %arg2: memref<32x128xf32, #tpu.memory_space<vmem>>, %arg3: memref<1x128xf32, #tpu.memory_space<vmem>>, %arg4: memref<128x4xf32, #tpu.memory_space<vmem>>, %arg5: memref<1x4xf32, #tpu.memory_space<vmem>>, %arg6: memref<8x4xf32, #tpu.memory_space<vmem>>) attributes {dimension_semantics = [#tpu.dimension_semantics<parallel>], iteration_bounds = array<i64: 1>, scalar_prefetch = 0 : i64, scratch_operands = 0 : i64, tpu.core_type = #tpu.core_type<tc>, window_params = [{transform_indices = @transform_0, window_bounds = array<i64: 8, 32>}, {pipeline_mode = #tpu.pipeline_mode<synchronous>, transform_indices = @transform_1, window_bounds = array<i64: 32, 128>}, {pipeline_mode = #tpu.pipeline_mode<synchronous>, transform_indices = @transform_2, window_bounds = array<i64: 1, 128>}, {pipeline_mode = #tpu.pipeline_mode<synchronous>, transform_indices = @transform_3, window_bounds = array<i64: 128, 4>}, {pipeline_mode = #tpu.pipeline_mode<synchronous>, transform_indices = @transform_4, window_bounds = array<i64: 1, 4>}, {transform_indices = @transform_5, window_bounds = array<i64: 8, 4>}]} {
    %c0 = arith.constant 0 : index
    %c0_0 = arith.constant 0 : index
    %0 = vector.load %arg1[%c0, %c0_0] : memref<8x32xf32, #tpu.memory_space<vmem>>, vector<8x32xf32>
    %c0_1 = arith.constant 0 : index
    %c0_2 = arith.constant 0 : index
    %1 = vector.load %arg2[%c0_1, %c0_2] : memref<32x128xf32, #tpu.memory_space<vmem>>, vector<32x128xf32>
    %cst = arith.constant dense<0.000000e+00> : vector<8x128xf32>
    %2 = tpu.matmul %0, %1, %cst {dimension_numbers = #tpu.dot_dimension_numbers<[1], [0], [0], [1], [0, 0, 1, 1], [], []>} : vector<8x32xf32>, vector<32x128xf32>, vector<8x128xf32> -> vector<8x128xf32>
    %c0_3 = arith.constant 0 : index
    %c0_4 = arith.constant 0 : index
    %3 = vector.load %arg3[%c0_3, %c0_4] : memref<1x128xf32, #tpu.memory_space<vmem>>, vector<1x128xf32>
    %4 = vector.broadcast %3 : vector<1x128xf32> to vector<8x128xf32>
    %5 = arith.addf %2, %4 : vector<8x128xf32>
    %cst_5 = arith.constant 0.000000e+00 : f32
    %6 = vector.broadcast %cst_5 : f32 to vector<8x128xf32>
    %7 = arith.maximumf %5, %6 : vector<8x128xf32>
    %c0_6 = arith.constant 0 : index
    %c0_7 = arith.constant 0 : index
    %8 = vector.load %arg4[%c0_6, %c0_7] : memref<128x4xf32, #tpu.memory_space<vmem>>, vector<128x4xf32>
    %cst_8 = arith.constant dense<0.000000e+00> : vector<8x4xf32>
    %9 = tpu.matmul %7, %8, %cst_8 {dimension_numbers = #tpu.dot_dimension_numbers<[1], [0], [0], [1], [0, 0, 1, 1], [], []>} : vector<8x128xf32>, vector<128x4xf32>, vector<8x4xf32> -> vector<8x4xf32>
    %c0_9 = arith.constant 0 : index
    %c0_10 = arith.constant 0 : index
    %10 = vector.load %arg5[%c0_9, %c0_10] : memref<1x4xf32, #tpu.memory_space<vmem>>, vector<1x4xf32>
    %11 = vector.broadcast %10 : vector<1x4xf32> to vector<8x4xf32>
    %12 = arith.addf %9, %11 : vector<8x4xf32>
    %c0_11 = arith.constant 0 : index
    %c0_12 = arith.constant 0 : index
    %13 = vector.load %arg6[%c0_11, %c0_12] : memref<8x4xf32, #tpu.memory_space<vmem>>, vector<8x4xf32>
    tpu.vector_store %arg6[%c0_11, %c0_12], %12 {strides = array<i32>} : memref<8x4xf32, #tpu.memory_space<vmem>>, vector<8x4xf32>,
    return
  }
  func.func @transform_0(%arg0: i32) -> (i32, i32) {
    %c0_i32 = arith.constant 0 : i32
    %c0_i32_0 = arith.constant 0 : i32
    return %arg0, %c0_i32 : i32, i32
  }
  func.func @transform_1(%arg0: i32) -> (i32, i32) {
    %c0_i32 = arith.constant 0 : i32
    %c0_i32_0 = arith.constant 0 : i32
    %c0_i32_1 = arith.constant 0 : i32
    return %c0_i32, %c0_i32_0 : i32, i32
  }
  func.func @transform_2(%arg0: i32) -> (i32, i32) {
    %c0_i32 = arith.constant 0 : i32
    %c0_i32_0 = arith.constant 0 : i32
    %c0_i32_1 = arith.constant 0 : i32
    return %c0_i32, %c0_i32_0 : i32, i32
  }
  func.func @transform_3(%arg0: i32) -> (i32, i32) {
    %c0_i32 = arith.constant 0 : i32
    %c0_i32_0 = arith.constant 0 : i32
    %c0_i32_1 = arith.constant 0 : i32
    return %c0_i32, %c0_i32_0 : i32, i32
  }
  func.func @transform_4(%arg0: i32) -> (i32, i32) {
    %c0_i32 = arith.constant 0 : i32
    %c0_i32_0 = arith.constant 0 : i32
    %c0_i32_1 = arith.constant 0 : i32
    return %c0_i32, %c0_i32_0 : i32, i32
  }
  func.func @transform_5(%arg0: i32) -> (i32, i32) {
    %c0_i32 = arith.constant 0 : i32
    %c0_i32_0 = arith.constant 0 : i32
    return %arg0, %c0_i32 : i32, i32
  }
}

</mosaic_0001>

<bundles_post_ra>
// kernel: mlp_forward.1
= control target key start
LH: loop header
LB: loop body
LE: loop exit
PB: predicated region body
PF: predicated region fallthrough
CT: control target
= control target key end

     0   :  { %v310_v0 = vmov 0.0|0.0   ;;  %vm311_vm0 = vmmov 0   ;;  %v312_v4 = vmov 0.0   ;;  %vm32_vm1 = vcmask 261120   ;;  %s415_s1 = inlined_call_operand.vmem [shape: f32[32,128], index: 1, kind: input, shape index: {}]   ;;  %s416_s3 = inlined_call_operand.vmem [shape: f32[128,4], index: 3, kind: input, shape index: {}]   ;;  %s417_s0 = inlined_call_operand.vmem [shape: f32[8,32], index: 0, kind: input, shape index: {}]   ;;  %s418_s2 = inlined_call_operand.vmem [shape: f32[1,128], index: 2, kind: input, shape index: {}]   ;;  %s419_s4 = inlined_call_operand.vmem [shape: f32[1,4], index: 4, kind: input, shape index: {}]   ;;  %s420_s5 = inlined_call_operand.vmem [shape: f32[8,4], index: 5, kind: output, shape index: {}]  }
   0x1   :  { %277 = vmatprep.subr.bf16.mxu0 %v310_v0  ;;  %v21_v1 = vld [vmem:[%s415_s1] sm:$0xff]  ;;  %v22_v2 = vld [vmem:[%s415_s1 + $0x8] sm:$0xff]  ;;  %v23_v3 = vld [vmem:[%s415_s1 + $0x10] sm:$0xff]  ;;  %239 = vmatprep.mubr.msk.f32.mxu0 %vm311_vm0, %v312_v4  ;;  %vm200_vm2 = vcmask 31744  }
   0x2   :  { %v278_v5 = vpack.c.bf16 %v22_v2, %v21_v1  ;;  %v24_v6 = vld [vmem:[%s415_s1 + $0x18] sm:$0xff]  ;;  %283 = vmatprep.subr.bf16.mxu1 %v310_v0  ;;  %v107_v7 = vld [vmem:[%s416_s3] sm:$0xff]  ;;  %274 = vmatprep.mubr.msk.f32.mxu1 %vm311_vm0, %v312_v4  ;;  %v108_v8 = vld [vmem:[%s416_s3 + $0x8] sm:$0xff] }
   0x3   :  { %v109_v9 = vld [vmem:[%s416_s3 + $0x10] sm:$0xff]  ;;  %v110_v10 = vld [vmem:[%s416_s3 + $0x18] sm:$0xff]  ;;  %v281_v11 = vpack.c.bf16 %v24_v6, %v23_v3  ;;  %v284_v12 = vpack.c.bf16 %v108_v8, %v107_v7  ;;  %v111_v14 = vld [vmem:[%s416_s3 + $0x20] sm:$0xff] }
   0x4   :  { %279 = vmatpush3.bf16.msra.mxu0 %v278_v5  ;;  %v287_v13 = vpack.c.bf16 %v110_v10, %v109_v9  ;;  %v112_v15 = vld [vmem:[%s416_s3 + $0x28] sm:$0xff]  ;;  %v20_v16 = vld [vmem:[%s417_s0] sm:$0xff]  ;;  %v113_v18 = vld [vmem:[%s416_s3 + $0x30] sm:$0xff] }
   0x5   :  { %280 = vmatprep.subr.bf16.mxu0 %v310_v0  ;;  %285 = vmatpush3.bf16.msra.mxu1 %v284_v12  ;;  %v290_v17 = vpack.c.bf16 %v112_v15, %v111_v14  ;;  %v114_v19 = vld [vmem:[%s416_s3 + $0x38] sm:$0xff]  ;;  %v115_v21 = vld [vmem:[%s416_s3 + $0x40] sm:$0xff]  ;;  %v116_v22 = vld [vmem:[%s416_s3 + $0x48] sm:$0xff] }
   0x6   :  { %286 = vmatprep.subr.bf16.mxu1 %v310_v0  ;;  %v293_v20 = vpack.c.bf16 %v114_v19, %v113_v18  ;;  %v296_v23 = vpack.c.bf16 %v116_v22, %v115_v21  ;;  %v117_v24 = vld [vmem:[%s416_s3 + $0x50] sm:$0xff]  ;;  %v118_v25 = vld [vmem:[%s416_s3 + $0x58] sm:$0xff]  ;;  %v119_v27 = vld [vmem:[%s416_s3 + $0x60] sm:$0xff] }
   0x7   :  { %v299_v26 = vpack.c.bf16 %v118_v25, %v117_v24  ;;  %v120_v28 = vld [vmem:[%s416_s3 + $0x68] sm:$0xff]  ;;  %v121_v30 = vld [vmem:[%s416_s3 + $0x70] sm:$0xff]  ;;  %v122_v31 = vld [vmem:[%s416_s3 + $0x78] sm:$0xff] }
   0x8   :  { %282 = vmatpush3.bf16.msra.mxu0 %v281_v11  ;;  %v302_v29 = vpack.c.bf16 %v120_v28, %v119_v27  ;;  %v305_v32 = vpack.c.bf16 %v122_v31, %v121_v30  ;;  %v206_v33 = vld [vmem:[%s418_s2] ss:$0 sm:$0xff] }
   0x9   :  { %288 = vmatpush3.bf16.msra.mxu1 %v287_v13  ;;  %v208_v38 = vld [vmem:[%s419_s4] ss:$0 sm:$0xff] }
   0xa   :  { %289 = vmatprep.subr.bf16.mxu1 %v310_v0 }
   0xb   :  { %240 = vmatmul.mubr.msk.f32.vlgmr.msra.gmra.mrb[0].mxu0 %vm32_vm1, %v20_v16 }
   0xd   :  { %291 = vmatpush3.bf16.msra.mxu1 %v290_v17 }
   0xe   :  { %292 = vmatprep.subr.bf16.mxu1 %v310_v0 }
  0x11   :  { %294 = vmatpush3.bf16.msra.mxu1 %v293_v20 }
  0x12   :  { %295 = vmatprep.subr.bf16.mxu1 %v310_v0 }
  0x15   :  { %297 = vmatpush3.bf16.msra.mxu1 %v296_v23 }
  0x16   :  { %298 = vmatprep.subr.bf16.mxu1 %v310_v0 }
  0x19   :  { %300 = vmatpush3.bf16.msra.mxu1 %v299_v26 }
  0x1a   :  { %301 = vmatprep.subr.bf16.mxu1 %v310_v0 }
  0x1d   :  { %303 = vmatpush3.bf16.msra.mxu1 %v302_v29 }
  0x1e   :  { %304 = vmatprep.subr.bf16.mxu1 %v310_v0 }
  0x21   :  { %306 = vmatpush3.bf16.msra.mxu1 %v305_v32 }
  0xde   :  { %v102_v34 = vpop.f32.mrb[0].mxu0 }
  0xdf   :  { %v103_v35 = vadd.f32 %v206_v33, %v102_v34  ;;  %v241_v36 = vpop.f32.mrb[1].mxu0 }
  0xe1   :  { %v106_v37 = vmax.f32 %v103_v35, 0.0 }
  0xe3   :  { %275 = vmatmul.mubr.f32.vlgmr.msra.gmra.mrb[0].mxu1 %v106_v37 }
 0x1b6   :  { %v196_v39 = vpop.f32.mrb[0].mxu1 }
 0x1b7   :  { %v197_v40 = vadd.f32 %v208_v38, %v196_v39  ;;  %v276_v41 = vpop.f32.mrb[1].mxu1 }
 0x1b9   :  { %201 = vst.msk [vmem:[%s420_s5] sm:$0xff] %vm200_vm2, %v197_v40 }

</bundles_post_ra>
